<compile_context>
chip_gen: v5e
topology: v5e:2x2
jax: 0.10.0
libtpu: 0.0.40
codegen_flags: <defaults>
</compile_context>

<pallas_src>
import jax
import jax.numpy as jnp
from jax import lax
from jax.experimental import pallas as pl
from jax.experimental.pallas import tpu as pltpu


# ---------------------------------------------------------------------------
# Pallas kernel: fused SharedMLP (per-layer 1x1 conv + folded BN + ReLU) and
# pooling over the `nsample` axis, emitting the transposed (C_out, tp) block.
# ---------------------------------------------------------------------------
def _make_mlp_pool_kernel(num_layers, nsample, pooling):
    def kernel(x_ref, *rest):
        o_ref = rest[-1]                 # (C_out, tp)
        wb = rest[:-1]                   # (W1, b1, W2, b2, ...)

        h = x_ref[...]                   # (tp * nsample, C0) bf16
        for l in range(num_layers):
            w = wb[2 * l][...]           # (C_l, C_{l+1}) bf16
            bias = wb[2 * l + 1][...]    # (1,  C_{l+1}) f32
            acc = jnp.dot(h.astype(jnp.bfloat16), w,
                          preferred_element_type=jnp.float32)
            if l == num_layers - 1 and pooling == "max":
                h = acc                  # bias + ReLU deferred past the max-pool
            else:
                h = jnp.maximum(acc + bias, 0.0)

        rows, c_last = h.shape
        tp = rows // nsample
        # nsample is a multiple of 8 in practice so this split lands on
        # sublane-tile boundaries (no relayout).
        h = h.reshape(tp, nsample, c_last)
        if pooling == "max":
            red = jnp.max(h, axis=1)                        # (tp, C_out)
            red = jnp.maximum(red + wb[-1][...], 0.0)       # exact: max/ReLU commute with +bias
        else:  # "avg"
            red = jnp.sum(h, axis=1) * (1.0 / nsample)
        # Transpose the small pooled tile so the store is lane-dense in the
        # final (B, C_out, npoint) layout.
        o_ref[...] = red.T.astype(o_ref.dtype)

    return kernel


def _round_up(x, m):
    return -(-x // m) * m


def _estimate_vmem_bytes(tp, ns, widths):
    """Per-grid-step VMEM estimate: double-buffered input/weight/output blocks
    (lane/sublane padded; bf16 (16,128) packing for MXU operands, f32 (8,128)
    otherwise) plus the largest pair of consecutive live layer activations."""
    rows = tp * ns
    c_out = widths[-1]
    x_blk = _round_up(rows, 16) * _round_up(widths[0], 128) * 2          # bf16 input block
    wb_blk = 0
    for cin, cout in zip(widths[:-1], widths[1:]):
        wb_blk += _round_up(cin, 16) * _round_up(cout, 128) * 2          # bf16 weight
        wb_blk += 8 * _round_up(cout, 128) * 4                           # f32 bias
    o_blk = _round_up(c_out, 8) * _round_up(tp, 128) * 4                 # f32 output block
    dbuf = 2 * (x_blk + wb_blk + o_blk)                                  # double buffering
    pair = max(_round_up(a, 128) + _round_up(b, 128)
               for a, b in zip(widths[:-1], widths[1:]))
    act = _round_up(rows, 8) * pair * 6                                  # f32 act + bf16 copy
    return dbuf + act


def _choose_points_per_block(B, npoint, ns, widths, budget=12 * 1024 * 1024):
    """Points (groups) per grid step. The output block's lane axis is tp, so tp
    must be a multiple of 128 or equal npoint (BlockSpec (8,128) rule). Prefer
    the whole npoint per step when it fits the activation budget; keep >= 2 total
    grid steps whenever possible so megacore sharding / pipelining have work."""
    def fits(tp):
        return _estimate_vmem_bytes(tp, ns, widths) <= budget

    if fits(npoint):
        tp = npoint
    else:
        tp = max(128, (npoint // 128) * 128)
        while tp > 128 and not fits(tp):
            tp -= 128
    if B == 1 and tp == npoint and npoint >= 256:
        tp = max(128, (npoint // 2) // 128 * 128)
    return tp


def shared_mlp_pool(grouped, weights, biases, *, pooling="max",
                    out_dtype=jnp.float32):
    """grouped: (B, npoint, nsample, C0) -> pooled features (B, C_last, npoint)."""
    assert pooling in ("max", "avg")
    B, S, ns, C0 = grouped.shape
    widths = [C0] + [int(w.shape[1]) for w in weights]
    c_out = widths[-1]

    tp = _choose_points_per_block(B, S, ns, widths)
    nb = pl.cdiv(S, tp)
    est = _estimate_vmem_bytes(tp, ns, widths)
    vmem_limit = int(max(32 << 20, min(48 << 20, 2 * est)))

    # bf16 DMA of the dominant HBM read; no host-side padding copy (partial
    # last block, if any, is handled by Pallas masked reads/stores).
    x = grouped.astype(jnp.bfloat16).reshape(B, S * ns, C0)

    in_specs = [pl.BlockSpec((None, tp * ns, C0), lambda b, i: (b, i, 0))]
    operands = [x]
    for w, b in zip(weights, biases):
        in_specs.append(pl.BlockSpec(tuple(w.shape), lambda b, i: (0, 0)))
        in_specs.append(pl.BlockSpec((1, int(b.shape[-1])), lambda b, i: (0, 0)))
        operands.append(w.astype(jnp.bfloat16))
        operands.append(b.reshape(1, -1).astype(jnp.float32))

    out = pl.pallas_call(
        _make_mlp_pool_kernel(len(weights), ns, pooling),
        out_shape=jax.ShapeDtypeStruct((B, c_out, S), out_dtype),
        grid_spec=pltpu.PrefetchScalarGridSpec(
            num_scalar_prefetch=0,
            grid=(B, nb),
            in_specs=in_specs,
            out_specs=pl.BlockSpec((None, c_out, tp), lambda b, i: (b, 0, i)),
        ),
        compiler_params=pltpu.CompilerParams(
            dimension_semantics=("parallel", "parallel"),
            vmem_limit_bytes=vmem_limit,
        ),
    )(*operands)
    return out                                   # (B, C_out, npoint)


# ---------------------------------------------------------------------------
# Plain-JAX pieces: FPS, ball query, grouping (sequential / data-dependent
# gathers; no clean Pallas win at these sizes).
# ---------------------------------------------------------------------------
def furthest_point_sample(xyz, npoint):
    """xyz (B, N, 3) -> (B, npoint) int32. Matches the CUDA FPS (seed = point 0)."""
    B, N, _ = xyz.shape

    def body(i, state):
        idxs, dists, last = state
        last_xyz = jax.vmap(lambda p, j: p[j])(xyz, last)            # (B, 3)
        d = jnp.sum((xyz - last_xyz[:, None, :]) ** 2, axis=-1)      # (B, N)
        dists = jnp.minimum(dists, d)
        nxt = jnp.argmax(dists, axis=-1).astype(jnp.int32)
        idxs = idxs.at[:, i].set(nxt)
        return idxs, dists, nxt

    idxs0 = jnp.zeros((B, npoint), jnp.int32)
    dists0 = jnp.full((B, N), 1e10, jnp.float32)
    last0 = jnp.zeros((B,), jnp.int32)
    idxs, _, _ = lax.fori_loop(1, npoint, body, (idxs0, dists0, last0))
    return idxs


def query_and_group(xyz, new_xyz, features, *, radius, nsample,
                    use_xyz=True, normalize_xyz=False):
    """Ball query (first `nsample` in-radius points in index order, padded with
    the first hit; empty neighborhoods fall back to index 0, matching the CUDA
    ball_query) + grouping. Returns grouped (B, npoint, nsample, 3+C) and
    grouped_xyz (relative)."""
    B, N, _ = xyz.shape
    d2 = jnp.sum((new_xyz[:, :, None, :] - xyz[:, None, :, :]) ** 2, axis=-1)
    within = d2 < radius * radius                                     # strict <, like CUDA
    cand = jnp.where(within, jnp.arange(N, dtype=jnp.int32)[None, None, :],
                     jnp.int32(N))
    cand = jnp.sort(cand, axis=-1)[:, :, :nsample]
    first = cand[:, :, :1]
    first = jnp.where(first >= N, jnp.int32(0), first)                # empty ball -> index 0
    grp_idx = jnp.where(cand >= N, first, cand)

    gather = jax.vmap(lambda arr, idx: arr[idx])
    grouped_xyz = gather(xyz, grp_idx) - new_xyz[:, :, None, :]
    if normalize_xyz:
        grouped_xyz = grouped_xyz / radius

    parts = []
    if use_xyz:
        parts.append(grouped_xyz)
    if features is not None:
        feats_t = jnp.transpose(features, (0, 2, 1))                  # (B, N, C)
        parts.append(gather(feats_t, grp_idx))
    grouped = jnp.concatenate(parts, axis=-1)                         # (B, S, ns, 3+C)
    return grouped, grouped_xyz


class PointnetSAModuleVotes:
    """JAX/Pallas port of the PyTorch PointnetSAModuleVotes forward pass."""

    def __init__(self, *, mlp, npoint=None, radius=None, nsample=None,
                 use_xyz=True, pooling="max", sigma=None, normalize_xyz=False,
                 key=None):
        # TODO(synk): GroupAll grouper (npoint=None), 'rbf' pooling, and
        # ret_unique_cnt are not ported; only the default max/avg paths are.
        assert npoint is not None and pooling in ("max", "avg")
        self.npoint = npoint
        self.radius = radius
        self.nsample = nsample
        self.pooling = pooling
        self.use_xyz = use_xyz
        self.sigma = sigma if sigma is not None else radius / 2.0
        self.normalize_xyz = normalize_xyz

        mlp_spec = list(mlp)
        if use_xyz and len(mlp_spec) > 0:
            mlp_spec[0] += 3

        # SharedMLP layer = Conv2d(1x1, bias=False) + BatchNorm2d + ReLU.
        # BN is folded (eval mode, default running stats) in f32, then the
        # weights are stored as bf16 MXU operands; biases stay f32.
        # TODO(synk): training-mode BatchNorm (batch statistics) not implemented.
        key = jax.random.PRNGKey(0) if key is None else key
        eps = 1e-5
        weights, biases = [], []
        for cin, cout in zip(mlp_spec[:-1], mlp_spec[1:]):
            key, sub = jax.random.split(key)
            bound = 1.0 / (cin ** 0.5)
            w = jax.random.uniform(sub, (cin, cout), jnp.float32, -bound, bound)
            gamma = jnp.ones((cout,), jnp.float32)
            beta = jnp.zeros((cout,), jnp.float32)
            mean = jnp.zeros((cout,), jnp.float32)
            var = jnp.ones((cout,), jnp.float32)
            scale = gamma / jnp.sqrt(var + eps)
            weights.append((w * scale[None, :]).astype(jnp.bfloat16))
            biases.append(beta - mean * scale)
        self.weights = weights
        self.biases = biases

    def __call__(self, xyz, features=None, inds=None):
        if inds is None:
            inds = furthest_point_sample(xyz, self.npoint)
        else:
            assert inds.shape[1] == self.npoint
        new_xyz = jax.vmap(lambda p, i: p[i])(xyz, inds)              # (B, npoint, 3)

        grouped, _grouped_xyz = query_and_group(
            xyz, new_xyz, features, radius=self.radius, nsample=self.nsample,
            use_xyz=self.use_xyz, normalize_xyz=self.normalize_xyz)

        # Kernel emits (B, C_out, npoint) directly (no wrapper transpose).
        new_features = shared_mlp_pool(grouped, self.weights, self.biases,
                                       pooling=self.pooling,
                                       out_dtype=jnp.float32)
        return new_xyz, new_features, inds


if __name__ == "__main__":
    key = jax.random.PRNGKey(0)
    B, N, C = 2, 64, 4
    npoint, nsample, radius = 16, 8, 0.4

    k_xyz, k_feat, k_mod = jax.random.split(key, 3)
    xyz = jax.random.uniform(k_xyz, (B, N, 3), dtype=jnp.float32)
    features = jax.random.normal(k_feat, (B, C, N), dtype=jnp.float32)

    module = PointnetSAModuleVotes(mlp=[C, 32, 64], npoint=npoint, radius=radius,
                                   nsample=nsample, use_xyz=True, pooling="max",
                                   normalize_xyz=False, key=k_mod)

    new_xyz, new_features, inds = module(xyz, features)
    new_features = jax.block_until_ready(new_features)

    assert new_xyz.shape == (B, npoint, 3)
    assert new_features.shape == (B, 64, npoint)
    assert inds.shape == (B, npoint)

    # Correctness check: same grouped tensor through a plain-JAX MLP + max-pool
    # mirroring the kernel's numerics (bf16 operands, f32 accumulation).
    grouped_ref, _ = query_and_group(xyz, new_xyz, features, radius=radius,
                                     nsample=nsample, use_xyz=True,
                                     normalize_xyz=False)
    h = grouped_ref.astype(jnp.bfloat16)
    for w, b in zip(module.weights, module.biases):
        h = jnp.einsum("bsnc,cd->bsnd", h.astype(jnp.bfloat16), w,
                       preferred_element_type=jnp.float32) + b
        h = jnp.maximum(h, 0.0)
    ref = jnp.transpose(jnp.max(h, axis=2), (0, 2, 1))                # (B, Cout, npoint)
    assert jnp.allclose(new_features, ref, atol=1e-2, rtol=1e-2), \
        "Pallas SharedMLP+maxpool mismatch vs reference"

    print("KERNEL_OK")
</pallas_src>

<mosaic_0001>
module attributes {stable_mosaic.version = 11 : i64} {
  func.func @kernel(%arg0: i32, %arg1: i32, %arg2: memref<1x128x7xbf16, #tpu.memory_space<vmem>>, %arg3: memref<7x32xbf16, #tpu.memory_space<vmem>>, %arg4: memref<1x32xf32, #tpu.memory_space<vmem>>, %arg5: memref<32x64xbf16, #tpu.memory_space<vmem>>, %arg6: memref<1x64xf32, #tpu.memory_space<vmem>>, %arg7: memref<1x64x16xf32, #tpu.memory_space<vmem>>) attributes {dimension_semantics = [#tpu.dimension_semantics<parallel>, #tpu.dimension_semantics<parallel>], iteration_bounds = array<i64: 2, 1>, scalar_prefetch = 0 : i64, scratch_operands = 0 : i64, tpu.core_type = #tpu.core_type<tc>, window_params = [{transform_indices = @transform_0, window_bounds = array<i64: 1, 128, 7>}, {pipeline_mode = #tpu.pipeline_mode<synchronous>, transform_indices = @transform_1, window_bounds = array<i64: 7, 32>}, {pipeline_mode = #tpu.pipeline_mode<synchronous>, transform_indices = @transform_2, window_bounds = array<i64: 1, 32>}, {pipeline_mode = #tpu.pipeline_mode<synchronous>, transform_indices = @transform_3, window_bounds = array<i64: 32, 64>}, {pipeline_mode = #tpu.pipeline_mode<synchronous>, transform_indices = @transform_4, window_bounds = array<i64: 1, 64>}, {transform_indices = @transform_5, window_bounds = array<i64: 1, 64, 16>}]} {
    %c0 = arith.constant 0 : index
    %c0_0 = arith.constant 0 : index
    %c0_1 = arith.constant 0 : index
    %0 = vector.load %arg2[%c0, %c0_0, %c0_1] : memref<1x128x7xbf16, #tpu.memory_space<vmem>>, vector<1x128x7xbf16>
    %1 = vector.shape_cast %0 : vector<1x128x7xbf16> to vector<128x7xbf16>
    %c0_2 = arith.constant 0 : index
    %c0_3 = arith.constant 0 : index
    %2 = vector.load %arg3[%c0_2, %c0_3] : memref<7x32xbf16, #tpu.memory_space<vmem>>, vector<7x32xbf16>
    %c0_4 = arith.constant 0 : index
    %c0_5 = arith.constant 0 : index
    %3 = vector.load %arg4[%c0_4, %c0_5] : memref<1x32xf32, #tpu.memory_space<vmem>>, vector<1x32xf32>
    %cst = arith.constant dense<0.000000e+00> : vector<128x32xf32>
    %4 = tpu.matmul %1, %2, %cst {dimension_numbers = #tpu.dot_dimension_numbers<[1], [0], [0], [1], [0, 0, 1, 1], [], []>} : vector<128x7xbf16>, vector<7x32xbf16>, vector<128x32xf32> -> vector<128x32xf32>
    %5 = vector.broadcast %3 : vector<1x32xf32> to vector<128x32xf32>
    %6 = arith.addf %4, %5 : vector<128x32xf32>
    %cst_6 = arith.constant 0.000000e+00 : f32
    %7 = vector.broadcast %cst_6 : f32 to vector<128x32xf32>
    %8 = arith.maximumf %6, %7 : vector<128x32xf32>
    %c0_7 = arith.constant 0 : index
    %c0_8 = arith.constant 0 : index
    %9 = vector.load %arg5[%c0_7, %c0_8] : memref<32x64xbf16, #tpu.memory_space<vmem>>, vector<32x64xbf16>
    %10 = arith.truncf %8 : vector<128x32xf32> to vector<128x32xbf16>
    %cst_9 = arith.constant dense<0.000000e+00> : vector<128x64xf32>
    %11 = tpu.matmul %10, %9, %cst_9 {dimension_numbers = #tpu.dot_dimension_numbers<[1], [0], [0], [1], [0, 0, 1, 1], [], []>} : vector<128x32xbf16>, vector<32x64xbf16>, vector<128x64xf32> -> vector<128x64xf32>
    %12 = vector.shape_cast %11 : vector<128x64xf32> to vector<16x8x64xf32>
    %cst_10 = arith.constant dense<0xFF800000> : vector<16x64xf32>
    %13 = vector.multi_reduction <maximumf>, %12, %cst_10 [1] : vector<16x8x64xf32> to vector<16x64xf32>
    %c0_11 = arith.constant 0 : index
    %c0_12 = arith.constant 0 : index
    %14 = vector.load %arg6[%c0_11, %c0_12] : memref<1x64xf32, #tpu.memory_space<vmem>>, vector<1x64xf32>
    %15 = vector.broadcast %14 : vector<1x64xf32> to vector<16x64xf32>
    %16 = arith.addf %13, %15 : vector<16x64xf32>
    %cst_13 = arith.constant 0.000000e+00 : f32
    %17 = vector.broadcast %cst_13 : f32 to vector<16x64xf32>
    %18 = arith.maximumf %16, %17 : vector<16x64xf32>
    %19 = tpu.transpose %18, [1, 0] : vector<16x64xf32> -> vector<64x16xf32>
    %c0_14 = arith.constant 0 : index
    %c0_15 = arith.constant 0 : index
    %c0_16 = arith.constant 0 : index
    %20 = vector.load %arg7[%c0_14, %c0_15, %c0_16] : memref<1x64x16xf32, #tpu.memory_space<vmem>>, vector<1x64x16xf32>
    %21 = vector.shape_cast %20 : vector<1x64x16xf32> to vector<64x16xf32>
    %22 = vector.shape_cast %19 : vector<64x16xf32> to vector<1x64x16xf32>
    tpu.vector_store %arg7[%c0_14, %c0_15, %c0_16], %22 {strides = array<i32>} : memref<1x64x16xf32, #tpu.memory_space<vmem>>, vector<1x64x16xf32>,
    return
  }
  func.func @transform_0(%arg0: i32, %arg1: i32) -> (i32, i32, i32) {
    %c0_i32 = arith.constant 0 : i32
    %c0_i32_0 = arith.constant 0 : i32
    return %arg0, %arg1, %c0_i32 : i32, i32, i32
  }
  func.func @transform_1(%arg0: i32, %arg1: i32) -> (i32, i32) {
    %c0_i32 = arith.constant 0 : i32
    %c0_i32_0 = arith.constant 0 : i32
    %c0_i32_1 = arith.constant 0 : i32
    return %c0_i32, %c0_i32_0 : i32, i32
  }
  func.func @transform_2(%arg0: i32, %arg1: i32) -> (i32, i32) {
    %c0_i32 = arith.constant 0 : i32
    %c0_i32_0 = arith.constant 0 : i32
    %c0_i32_1 = arith.constant 0 : i32
    return %c0_i32, %c0_i32_0 : i32, i32
  }
  func.func @transform_3(%arg0: i32, %arg1: i32) -> (i32, i32) {
    %c0_i32 = arith.constant 0 : i32
    %c0_i32_0 = arith.constant 0 : i32
    %c0_i32_1 = arith.constant 0 : i32
    return %c0_i32, %c0_i32_0 : i32, i32
  }
  func.func @transform_4(%arg0: i32, %arg1: i32) -> (i32, i32) {
    %c0_i32 = arith.constant 0 : i32
    %c0_i32_0 = arith.constant 0 : i32
    %c0_i32_1 = arith.constant 0 : i32
    return %c0_i32, %c0_i32_0 : i32, i32
  }
  func.func @transform_5(%arg0: i32, %arg1: i32) -> (i32, i32, i32) {
    %c0_i32 = arith.constant 0 : i32
    %c0_i32_0 = arith.constant 0 : i32
    return %arg0, %c0_i32, %arg1 : i32, i32, i32
  }
}

</mosaic_0001>

<bundles_post_ra>
// kernel: tpu_custom_call.1
= control target key start
LH: loop header
LB: loop body
LE: loop exit
PB: predicated region body
PF: predicated region fallthrough
CT: control target
= control target key end

     0   :  { %s1009_s18 = smov 0   ;;  %s1011_s19 = smov 0   ;;  %s1136_s0 = inlined_call_operand.vmem [shape: bf16[2,128,7], index: 0, kind: input, shape index: {}]   ;;  %s1137_s1 = inlined_call_operand.vmem [shape: bf16[7,32], index: 1, kind: input, shape index: {}]   ;;  %s1138_s2 = inlined_call_operand.vmem [shape: f32[1,32], index: 2, kind: input, shape index: {}]   ;;  %s1139_s3 = inlined_call_operand.vmem [shape: bf16[32,64], index: 3, kind: input, shape index: {}]   ;;  %s1140_s4 = inlined_call_operand.vmem [shape: f32[1,64], index: 4, kind: input, shape index: {}]   ;;  %s1141_s5 = inlined_call_operand.vmem [shape: f32[2,64,16], index: 5, kind: output, shape index: {}]  }
   0x1   :  { %s1013_s20 = smov 0  }
   0x2 LB: > { %s27_s21 = sadd.s32 1, %s972_s19  ;;  %p848_p0 = scmp.ge.s32.totalorder %s976_s20, 1  ;;  %s976_s20 = sphi %s1013_s20, %s15_s20   ;;  %s972_s19 = sphi %s1011_s19, %s1143_s19   ;;  %s968_s18 = sphi %s1009_s18, %s1142_s18  }
   0x3   : > { %p29_p1 = scmp.ge.s32.totalorder %s27_s21, 2  ;;  %p208_p2 = scmp.lt.s32.totalorder %s976_s20, 3 }
   0x5   : > { %s1145_s21 = smov (%p29_p1, %s27_s21), 0  ;;  %p209_p3 = pnand %p848_p0, %p208_p2 }
   0x6   : > { %p244_p4 = scmp.lt.s32.totalorder (!%p209_p3), %s968_s18, 1 }
   0x7   : > { %212 = sbr.rel (%p209_p3) target bundleno = 646 (0x286), region = 40 }
   0xc   : > { %v278_v0 = vld [vmem:[%s1137_s1] sm:$0xf]  ;;  %vm348_vm0 = vcmask 1042432   ;;  %vm349_vm1 = vcmask 1043456   ;;  %v978_v1 = vmov 65535   ;;  %s1147_s18 = smov (!%p244_p4, %s968_s18), 1 }
   0xd   : > { %v350_v2 = vsel %vm348_vm0, 4294967295, %v978_v1  ;;  %s911_s24 = sshll.u32 %s1147_s18, 6  ;;  %vm323_vm2 = vcmask 56320   ;;  %v922_v13 = vld [vmem:[%s1139_s3 + $0x8] sm:$0xff]  ;;  %v921_v14 = vld [vmem:[%s1139_s3] sm:$0xff]  ;;  %vm444_vm3 = vcmask 261120  }
   0xe   : > { %v351_v3 = vsel %vm349_vm1, %v350_v2, 0  ;;  %s251_s27 = scalar_lea.vmem %s1136_s0, %s911_s24  ;;  %475 = vmatpush.bf16.msra.mxu1 %v922_v13  ;;  %924 = vmatpush.bf16.msra.mxu2 %v922_v13  ;;  %v952_v16 = vld [vmem:[%s1138_s2] ss:$0 sm:$0xff]  ;;  %vm518_vm4 = vcmask 523264   ;;  %vm684_vm5 = vcmask 1041409   ;;  %vm687_vm6 = vcmask 1042434   ;;  %s260_s13 = scalar_lea.vmem %s1141_s5, %s911_s24 }
   0xf   : > { %v353_v4 = vand.u32 %v351_v3, %v278_v0  ;;  %v913_v5 = vld [vmem:[%s251_s27] sm:$0xff]  ;;  %v914_v6 = vld [vmem:[%s251_s27 + $0x8] sm:$0xff]  ;;  %v915_v7 = vld [vmem:[%s251_s27 + $0x10] sm:$0xff]  ;;  %vm690_vm7 = vcmask 1043459   ;;  %vm693_vm8 = vcmask 1044484   ;;  %vm696_vm9 = vcmask 1045509  }
  0x10   : > { %v918_v8 = vld [vmem:[%s251_s27 + $0x28] sm:$0xff]  ;;  %v916_v9 = vld [vmem:[%s251_s27 + $0x18] sm:$0xff]  ;;  %v919_v10 = vld [vmem:[%s251_s27 + $0x30] sm:$0xff]  ;;  %vm699_vm10 = vcmask 1046534   ;;  %vm702_vm11 = vcmask 1047559   ;;  %vm752_vm12 = vcmask 130048  }
  0x11   : > { %362 = vmatpush.bf16.msra.mxu0 %v353_v4  ;;  %923 = vmatpush.bf16.msra.mxu3 %v353_v4  ;;  %v917_v11 = vld [vmem:[%s251_s27 + $0x20] sm:$0xff]  ;;  %v920_v12 = vld [vmem:[%s251_s27 + $0x38] sm:$0xff] }
  0x12   : > { %476 = vmatpush.bf16.msra.mxu1 %v921_v14  ;;  %925 = vmatpush.bf16.msra.mxu2 %v921_v14 }
  0x14   : > { %885 = vmatmul.msk.bf16.vlgmr.msra.gmra.mxu0 %vm323_vm2, %v913_v5  ;;  %890 = vmatmul.msk.bf16.vlgmr.msra.gmra.mxu3 %vm323_vm2, %v918_v8 }
  0x24   : > { %886 = vmatmul.msk.bf16.gmra.mxu0 %vm323_vm2, %v914_v6  ;;  %891 = vmatmul.msk.bf16.gmra.mxu3 %vm323_vm2, %v919_v10 }
  0x34   : > { %887 = vmatmul.msk.bf16.gmra.mxu0 %vm323_vm2, %v915_v7  ;;  %892 = vmatmul.msk.bf16.gmra.mxu3 %vm323_vm2, %v920_v12 }
  0x44   : > { %888 = vmatmul.msk.bf16.gmra.mxu0 %vm323_vm2, %v916_v9 }
  0x54   : > { %889 = vmatmul.msk.bf16.gmra.mxu0 %vm323_vm2, %v917_v11 }
  0x91   : > { %v364_v15 = vpop.f32.mrf.mxu0 }
  0x92   : > { %v365_v17 = vadd.f32 %v952_v16, %v364_v15 }
  0x94   : > { %v404_v20 = vmax.f32 %v365_v17, 0.0 }
  0x97   : > { %v389_v45 = vpop.f32.mrf.mxu3 }
  0x98   : > { %v390_v54 = vadd.f32 %v952_v16, %v389_v45 }
  0x99   : > { %v366_v18 = vpop.f32.mrf.mxu0 }
  0x9a   : > { %v367_v19 = vadd.f32 %v952_v16, %v366_v18  ;;  %v414_v56 = vmax.f32 %v390_v54, 0.0 }
  0x9c   : > { %v405_v21 = vmax.f32 %v367_v19, 0.0 }
  0x9e   : > { %v424_v22 = vpack.c.bf16 %v405_v21, %v404_v20 }
  0x9f   : > { %v391_v49 = vpop.f32.mrf.mxu3 }
  0xa0   : > { %901 = vmatmul.msk.bf16.vlgmr.msra.gmra.mxu1 %vm444_vm3, %v424_v22  ;;  %v392_v55 = vadd.f32 %v952_v16, %v391_v49 }
  0xa1   : > { %v369_v23 = vpop.f32.mrf.mxu0 }
  0xa2   : > { %v370_v24 = vadd.f32 %v952_v16, %v369_v23  ;;  %v415_v57 = vmax.f32 %v392_v55, 0.0 }
  0xa4   : > { %v406_v27 = vmax.f32 %v370_v24, 0.0  ;;  %v429_v58 = vpack.c.bf16 %v415_v57, %v414_v56  ;;  %v1073_v57 = vld [vmem:[%s1140_s4] ss:$0 sm:$0xff] }
  0xa7   : > { %v394_v53 = vpop.f32.mrf.mxu3 }
  0xa8   : > { %v395_v60 = vadd.f32 %v952_v16, %v394_v53 }
  0xa9   : > { %v371_v25 = vpop.f32.mrf.mxu0 }
  0xaa   : > { %v372_v26 = vadd.f32 %v952_v16, %v371_v25  ;;  %v416_v63 = vmax.f32 %v395_v60, 0.0 }
  0xac   : > { %v407_v28 = vmax.f32 %v372_v26, 0.0 }
  0xae   : > { %v425_v29 = vpack.c.bf16 %v407_v28, %v406_v27 }
  0xaf   : > { %v396_v59 = vpop.f32.mrf.mxu3 }
  0xb0   : > { %902 = vmatmul.msk.bf16.gmra.mxu1 %vm444_vm3, %v425_v29  ;;  %v397_v61 = vadd.f32 %v952_v16, %v396_v59 }
  0xb1   : > { %v374_v30 = vpop.f32.mrf.mxu0 }
  0xb2   : > { %v375_v31 = vadd.f32 %v952_v16, %v374_v30  ;;  %v417_v0 = vmax.f32 %v397_v61, 0.0 }
  0xb4   : > { %v408_v34 = vmax.f32 %v375_v31, 0.0  ;;  %v430_v1 = vpack.c.bf16 %v417_v0, %v416_v63 }
  0xb7   : > { %v399_v62 = vpop.f32.mrf.mxu3 }
  0xb8   : > { %v400_v3 = vadd.f32 %v952_v16, %v399_v62 }
  0xb9   : > { %v376_v32 = vpop.f32.mrf.mxu0 }
  0xba   : > { %v377_v33 = vadd.f32 %v952_v16, %v376_v32  ;;  %v418_v5 = vmax.f32 %v400_v3, 0.0 }
  0xbc   : > { %v409_v35 = vmax.f32 %v377_v33, 0.0 }
  0xbe   : > { %v426_v36 = vpack.c.bf16 %v409_v35, %v408_v34 }
  0xbf   : > { %v401_v2 = vpop.f32.mrf.mxu3 }
  0xc0   : > { %903 = vmatmul.msk.bf16.gmra.mxu1 %vm444_vm3, %v426_v36  ;;  %v402_v4 = vadd.f32 %v952_v16, %v401_v2 }
  0xc1   : > { %v379_v37 = vpop.f32.mrf.mxu0 }
  0xc2   : > { %v380_v38 = vadd.f32 %v952_v16, %v379_v37  ;;  %v419_v6 = vmax.f32 %v402_v4, 0.0 }
  0xc4   : > { %v410_v41 = vmax.f32 %v380_v38, 0.0  ;;  %v431_v7 = vpack.c.bf16 %v419_v6, %v418_v5 }
  0xc9   : > { %v381_v39 = vpop.f32.mrf.mxu0 }
  0xca   : > { %v382_v40 = vadd.f32 %v952_v16, %v381_v39 }
  0xcc   : > { %v411_v42 = vmax.f32 %v382_v40, 0.0 }
  0xce   : > { %v427_v43 = vpack.c.bf16 %v411_v42, %v410_v41 }
  0xd0   : > { %904 = vmatmul.msk.bf16.gmra.mxu1 %vm444_vm3, %v427_v43 }
  0xd1   : > { %v384_v44 = vpop.f32.mrf.mxu0 }
  0xd2   : > { %v385_v46 = vadd.f32 %v952_v16, %v384_v44 }
  0xd4   : > { %v412_v50 = vmax.f32 %v385_v46, 0.0 }
  0xd9   : > { %v386_v47 = vpop.f32.mrf.mxu0 }
  0xda   : > { %v387_v48 = vadd.f32 %v952_v16, %v386_v47 }
  0xdc   : > { %v413_v51 = vmax.f32 %v387_v48, 0.0 }
  0xde   : > { %v428_v52 = vpack.c.bf16 %v413_v51, %v412_v50 }
  0xe0   : > { %905 = vmatmul.msk.bf16.vlgmr.msra.gmra.mxu2 %vm444_vm3, %v428_v52 }
  0xf0   : > { %906 = vmatmul.msk.bf16.gmra.mxu2 %vm444_vm3, %v429_v58 }
 0x100   : > { %907 = vmatmul.msk.bf16.gmra.mxu2 %vm444_vm3, %v430_v1 }
 0x110   : > { %908 = vmatmul.msk.bf16.gmra.mxu2 %vm444_vm3, %v431_v7 }
 0x11d   : > { %v478_v8 = vpop.f32.mrf.mxu1 }
 0x11e   : > { %v519_v20 = vsel %vm518_vm4, %v478_v8, -inf }
 0x11f   : > { %v520_v24 = vrot.slane %v519_v20, 4 }
 0x121   : > { %v521_v32 = vmax.f32 %v519_v20, %v520_v24 }
 0x123   : > { %v522_v39 = vrot.slane %v521_v32, 2 }
 0x125   : > { %v480_v9 = vpop.f32.mrf.mxu1  ;;  %v523_v48 = vmax.f32 %v521_v32, %v522_v39 }
 0x126   : > { %v526_v12 = vsel %vm518_vm4, %v480_v9, -inf }
 0x127   : > { %v527_v17 = vrot.slane %v526_v12, 4  ;;  %v524_v56 = vrot.slane %v523_v48, 1 }
 0x129   : > { %v528_v22 = vmax.f32 %v526_v12, %v527_v17  ;;  %v525_v4 = vmax.f32 %v523_v48, %v524_v56 }
 0x12b   : > { %v529_v29 = vrot.slane %v528_v22, 2 }
 0x12d   : > { %v483_v10 = vpop.f32.mrf.mxu1  ;;  %v530_v36 = vmax.f32 %v528_v22, %v529_v29 }
 0x12e   : > { %v533_v13 = vsel %vm518_vm4, %v483_v10, -inf }
 0x12f   : > { %v534_v18 = vrot.slane %v533_v13, 4  ;;  %v531_v44 = vrot.slane %v530_v36, 1 }
 0x131   : > { %v535_v23 = vmax.f32 %v533_v13, %v534_v18  ;;  %v532_v52 = vmax.f32 %v530_v36, %v531_v44 }
 0x133   : > { %v536_v31 = vrot.slane %v535_v23, 2  ;;  %v636_v63 = vadd.f32 %v1073_v57, %v532_v52 }
 0x135   : > { %v485_v11 = vpop.f32.mrf.mxu1  ;;  %v537_v38 = vmax.f32 %v535_v23, %v536_v31  ;;  %v652_v9 = vmax.f32 %v636_v63, 0.0 }
 0x136   : > { %v540_v15 = vsel %vm518_vm4, %v485_v11, -inf }
 0x137   : > { %v541_v19 = vrot.slane %v540_v15, 4  ;;  %v538_v47 = vrot.slane %v537_v38, 1  ;;  %v683_v18 = vrot.slane %v652_v9, 7 }
 0x139   : > { %v542_v25 = vmax.f32 %v540_v15, %v541_v19  ;;  %v539_v55 = vmax.f32 %v537_v38, %v538_v47 }
 0x13b   : > { %v543_v33 = vrot.slane %v542_v25, 2  ;;  %v637_v3 = vadd.f32 %v1073_v57, %v539_v55 }
 0x13d   : > { %v488_v14 = vpop.f32.mrf.mxu1  ;;  %v544_v40 = vmax.f32 %v542_v25, %v543_v33  ;;  %v653_v12 = vmax.f32 %v637_v3, 0.0 }
 0x13e   : > { %v547_v16 = vsel %vm518_vm4, %v488_v14, -inf  ;;  %v635_v14 = vadd.f32 %v1073_v57, %v525_v4 }
 0x13f   : > { %v548_v21 = vrot.slane %v547_v16, 4  ;;  %v545_v49 = vrot.slane %v544_v40, 1 }
 0x140   : > { %v651_v23 = vmax.f32 %v635_v14, 0.0 }
 0x141   : > { %v549_v27 = vmax.f32 %v547_v16, %v548_v21  ;;  %v546_v58 = vmax.f32 %v544_v40, %v545_v49  ;;  %v686_v21 = vrot.slane %v653_v12, 6 }
 0x143   : > { %v550_v35 = vrot.slane %v549_v27, 2  ;;  %v638_v5 = vadd.f32 %v1073_v57, %v546_v58 }
 0x145   : > { %v490_v26 = vpop.f32.mrf.mxu1  ;;  %v551_v42 = vmax.f32 %v549_v27, %v550_v35  ;;  %v654_v15 = vmax.f32 %v638_v5, 0.0  ;;  %v685_v27 = vsel %vm684_vm5, %v683_v18, %v651_v23 }
 0x146   : > { %v554_v28 = vsel %vm518_vm4, %v490_v26, -inf  ;;  %v688_v31 = vsel %vm687_vm6, %v686_v21, %v685_v27 }
 0x147   : > { %v555_v30 = vrot.slane %v554_v28, 4  ;;  %v552_v51 = vrot.slane %v551_v42, 1  ;;  %v689_v24 = vrot.slane %v654_v15, 5 }
 0x149   : > { %v556_v34 = vmax.f32 %v554_v28, %v555_v30  ;;  %v553_v61 = vmax.f32 %v551_v42, %v552_v51 }
 0x14b   : > { %v557_v37 = vrot.slane %v556_v34, 2  ;;  %v639_v8 = vadd.f32 %v1073_v57, %v553_v61 }
 0x14d   : > { %v493_v41 = vpop.f32.mrf.mxu1  ;;  %v558_v45 = vmax.f32 %v556_v34, %v557_v37  ;;  %v655_v16 = vmax.f32 %v639_v8, 0.0  ;;  %v691_v34 = vsel %vm690_vm7, %v689_v24, %v688_v31 }
 0x14e   : > { %v561_v43 = vsel %vm518_vm4, %v493_v41, -inf }
 0x14f   : > { %v562_v46 = vrot.slane %v561_v43, 4  ;;  %v559_v53 = vrot.slane %v558_v45, 1  ;;  %v692_v26 = vrot.slane %v655_v16, 4 }
 0x151   : > { %v563_v50 = vmax.f32 %v561_v43, %v562_v46  ;;  %v560_v0 = vmax.f32 %v558_v45, %v559_v53  ;;  %v694_v35 = vsel %vm693_vm8, %v692_v26, %v691_v34 }
 0x153   : > { %v564_v54 = vrot.slane %v563_v50, 2  ;;  %v640_v10 = vadd.f32 %v1073_v57, %v560_v0 }
 0x155   : > { %v565_v59 = vmax.f32 %v563_v50, %v564_v54  ;;  %v495_v60 = vpop.f32.mrf.mxu1  ;;  %v656_v19 = vmax.f32 %v640_v10, 0.0 }
 0x156   : > { %v568_v62 = vsel %vm518_vm4, %v495_v60, -inf }
 0x157   : > { %v566_v1 = vrot.slane %v565_v59, 1  ;;  %v569_v2 = vrot.slane %v568_v62, 4  ;;  %v695_v28 = vrot.slane %v656_v19, 3 }
 0x159   : > { %v567_v6 = vmax.f32 %v565_v59, %v566_v1  ;;  %v570_v7 = vmax.f32 %v568_v62, %v569_v2  ;;  %v697_v36 = vsel %vm696_vm9, %v695_v28, %v694_v35 }
 0x15b   : > { %v571_v11 = vrot.slane %v570_v7, 2  ;;  %v641_v13 = vadd.f32 %v1073_v57, %v567_v6 }
 0x15d   : > { %v572_v17 = vmax.f32 %v570_v7, %v571_v11  ;;  %v657_v22 = vmax.f32 %v641_v13, 0.0 }
 0x15f   : > { %v573_v20 = vrot.slane %v572_v17, 1  ;;  %v698_v32 = vrot.slane %v657_v22, 2 }
 0x161   : > { %v574_v25 = vmax.f32 %v572_v17, %v573_v20  ;;  %v700_v38 = vsel %vm699_vm10, %v698_v32, %v697_v36 }
 0x163   : > { %v498_v29 = vpop.f32.mrf.mxu2  ;;  %v642_v30 = vadd.f32 %v1073_v57, %v574_v25 }
 0x164   : > { %v575_v51 = vsel %vm518_vm4, %v498_v29, -inf }
 0x165   : > { %v658_v33 = vmax.f32 %v642_v30, 0.0  ;;  %v576_v55 = vrot.slane %v575_v51, 4 }
 0x167   : > { %v701_v37 = vrot.slane %v658_v33, 1  ;;  %v577_v0 = vmax.f32 %v575_v51, %v576_v55 }
 0x169   : > { %v703_v39 = vsel %vm702_vm11, %v701_v37, %v700_v38  ;;  %v578_v7 = vrot.slane %v577_v0, 2 }
 0x16a   : > { %720 = vxpose.xlu0.b32.start [1/2] (short) (narrow) %v703_v39, 64 }
 0x16b   : > { %v500_v40 = vpop.f32.mrf.mxu2  ;;  %v579_v17 = vmax.f32 %v577_v0, %v578_v7 }
 0x16c   : > { %v582_v43 = vsel %vm518_vm4, %v500_v40, -inf }
 0x16d   : > { %v583_v47 = vrot.slane %v582_v43, 4  ;;  %v580_v24 = vrot.slane %v579_v17, 1 }
 0x16f   : > { %v584_v53 = vmax.f32 %v582_v43, %v583_v47  ;;  %v581_v35 = vmax.f32 %v579_v17, %v580_v24 }
 0x171   : > { %v585_v61 = vrot.slane %v584_v53, 2 }
 0x173   : > { %v503_v41 = vpop.f32.mrf.mxu2  ;;  %v586_v4 = vmax.f32 %v584_v53, %v585_v61 }
 0x174   : > { %v589_v44 = vsel %vm518_vm4, %v503_v41, -inf }
 0x175   : > { %v590_v49 = vrot.slane %v589_v44, 4  ;;  %v587_v12 = vrot.slane %v586_v4, 1 }
 0x177   : > { %v591_v54 = vmax.f32 %v589_v44, %v590_v49  ;;  %v588_v20 = vmax.f32 %v586_v4, %v587_v12 }
 0x179   : > { %v592_v63 = vrot.slane %v591_v54, 2  ;;  %v644_v30 = vadd.f32 %v1073_v57, %v588_v20 }
 0x17b   : > { %v505_v42 = vpop.f32.mrf.mxu2  ;;  %v593_v6 = vmax.f32 %v591_v54, %v592_v63  ;;  %v660_v40 = vmax.f32 %v644_v30, 0.0 }
 0x17c   : > { %v596_v46 = vsel %vm518_vm4, %v505_v42, -inf }
 0x17d   : > { %v597_v50 = vrot.slane %v596_v46, 4  ;;  %v594_v15 = vrot.slane %v593_v6, 1  ;;  %v704_v49 = vrot.slane %v660_v40, 7 }
 0x17f   : > { %v598_v56 = vmax.f32 %v596_v46, %v597_v50  ;;  %v595_v23 = vmax.f32 %v593_v6, %v594_v15 }
 0x181   : > { %v599_v1 = vrot.slane %v598_v56, 2  ;;  %v645_v34 = vadd.f32 %v1073_v57, %v595_v23 }
 0x183   : > { %v508_v45 = vpop.f32.mrf.mxu2  ;;  %v600_v8 = vmax.f32 %v598_v56, %v599_v1  ;;  %v661_v43 = vmax.f32 %v645_v34, 0.0 }
 0x184   : > { %v603_v48 = vsel %vm518_vm4, %v508_v45, -inf  ;;  %v643_v45 = vadd.f32 %v1073_v57, %v581_v35 }
 0x185   : > { %v604_v52 = vrot.slane %v603_v48, 4  ;;  %v601_v16 = vrot.slane %v600_v8, 1 }
 0x186   : > { %v659_v54 = vmax.f32 %v643_v45, 0.0 }
 0x187   : > { %v605_v59 = vmax.f32 %v603_v48, %v604_v52  ;;  %v602_v25 = vmax.f32 %v600_v8, %v601_v16  ;;  %v706_v52 = vrot.slane %v661_v43, 6 }
 0x189   : > { %v606_v3 = vrot.slane %v605_v59, 2  ;;  %v646_v36 = vadd.f32 %v1073_v57, %v602_v25 }
 0x18b   : > { %v510_v58 = vpop.f32.mrf.mxu2  ;;  %v607_v10 = vmax.f32 %v605_v59, %v606_v3  ;;  %v662_v46 = vmax.f32 %v646_v36, 0.0  ;;  %v705_v59 = vsel %vm684_vm5, %v704_v49, %v659_v54 }
 0x18c   : > { %v610_v60 = vsel %vm518_vm4, %v510_v58, -inf }
 0x18d   : > { %v611_v62 = vrot.slane %v610_v60, 4  ;;  %v608_v19 = vrot.slane %v607_v10, 1  ;;  %v708_v55 = vrot.slane %v662_v46, 5 }
 0x18f   : > { %v612_v2 = vmax.f32 %v610_v60, %v611_v62  ;;  %v609_v28 = vmax.f32 %v607_v10, %v608_v19  ;;  %v707_v62 = vsel %vm687_vm6, %v706_v52, %v705_v59 }
 0x190   : > { %v709_v1 = vsel %vm690_vm7, %v708_v55, %v707_v62 }
 0x191   : > { %v613_v5 = vrot.slane %v612_v2, 2  ;;  %v647_v39 = vadd.f32 %v1073_v57, %v609_v28 }
 0x193   : > { %v513_v9 = vpop.f32.mrf.mxu2  ;;  %v614_v13 = vmax.f32 %v612_v2, %v613_v5  ;;  %v663_v48 = vmax.f32 %v647_v39, 0.0 }
 0x194   : > { %v617_v11 = vsel %vm518_vm4, %v513_v9, -inf }
 0x195   : > { %v618_v14 = vrot.slane %v617_v11, 4  ;;  %v615_v21 = vrot.slane %v614_v13, 1  ;;  %v710_v58 = vrot.slane %v663_v48, 4 }
 0x197   : > { %v619_v18 = vmax.f32 %v617_v11, %v618_v14  ;;  %v616_v31 = vmax.f32 %v614_v13, %v615_v21  ;;  %v711_v2 = vsel %vm693_vm8, %v710_v58, %v709_v1 }
 0x199   : > { %v620_v22 = vrot.slane %v619_v18, 2  ;;  %v648_v41 = vadd.f32 %v1073_v57, %v616_v31 }
 0x19b   : > { %v621_v26 = vmax.f32 %v619_v18, %v620_v22  ;;  %v515_v27 = vpop.f32.mrf.mxu2  ;;  %v664_v50 = vmax.f32 %v648_v41, 0.0 }
 0x19c   : > { %v624_v29 = vsel %vm518_vm4, %v515_v27, -inf }
 0x19d   : > { %v622_v32 = vrot.slane %v621_v26, 1  ;;  %v625_v33 = vrot.slane %v624_v29, 4  ;;  %v712_v60 = vrot.slane %v664_v50, 3 }
 0x19f   : > { %v623_v37 = vmax.f32 %v621_v26, %v622_v32  ;;  %v626_v38 = vmax.f32 %v624_v29, %v625_v33  ;;  %v713_v3 = vsel %vm696_vm9, %v712_v60, %v711_v2 }
 0x1a1   : > { %v627_v42 = vrot.slane %v626_v38, 2  ;;  %v649_v44 = vadd.f32 %v1073_v57, %v623_v37 }
 0x1a3   : > { %v628_v47 = vmax.f32 %v626_v38, %v627_v42  ;;  %v665_v53 = vmax.f32 %v649_v44, 0.0 }
 0x1a5   : > { %v629_v51 = vrot.slane %v628_v47, 1  ;;  %v714_v63 = vrot.slane %v665_v53, 2 }
 0x1a7   : > { %v630_v56 = vmax.f32 %v628_v47, %v629_v51  ;;  %v715_v5 = vsel %vm699_vm10, %v714_v63, %v713_v3 }
 0x1a9   : > { %v650_v61 = vadd.f32 %v1073_v57, %v630_v56 }
 0x1ab   : > { %v666_v0 = vmax.f32 %v650_v61, 0.0 }
 0x1ad   : > { %v716_v4 = vrot.slane %v666_v0, 1 }
 0x1af   : > { %v717_v6 = vsel %vm702_vm11, %v716_v4, %v715_v5 }
 0x1b0   : > { %721 = vxpose.xlu0.b32.end [2/2] (short) (narrow) %v717_v6, 64 }
 0x24c   : > { %v736_v57 = vpop.trf.xlu0 }
 0x24d   : > { %753 = vst.msk [vmem:[%s260_s13] sm:$0xff] %vm752_vm12, %v736_v57 }
 0x254   : > { %v737_v7 = vpop.trf.xlu0 }
 0x255   : > { %754 = vst.msk [vmem:[%s260_s13 + $0x8] sm:$0xff] %vm752_vm12, %v737_v7 }
 0x25c   : > { %v738_v8 = vpop.trf.xlu0 }
 0x25d   : > { %755 = vst.msk [vmem:[%s260_s13 + $0x10] sm:$0xff] %vm752_vm12, %v738_v8 }
 0x264   : > { %v739_v9 = vpop.trf.xlu0 }
 0x265   : > { %756 = vst.msk [vmem:[%s260_s13 + $0x18] sm:$0xff] %vm752_vm12, %v739_v9 }
 0x26c   : > { %v740_v10 = vpop.trf.xlu0 }
 0x26d   : > { %757 = vst.msk [vmem:[%s260_s13 + $0x20] sm:$0xff] %vm752_vm12, %v740_v10 }
 0x274   : > { %v741_v11 = vpop.trf.xlu0 }
 0x275   : > { %758 = vst.msk [vmem:[%s260_s13 + $0x28] sm:$0xff] %vm752_vm12, %v741_v11 }
 0x27c   : > { %v742_v12 = vpop.trf.xlu0 }
 0x27d   : > { %759 = vst.msk [vmem:[%s260_s13 + $0x30] sm:$0xff] %vm752_vm12, %v742_v12 }
 0x284   : > { %v743_v13 = vpop.trf.xlu0 }
 0x285   : > { %760 = vst.msk [vmem:[%s260_s13 + $0x38] sm:$0xff] %vm752_vm12, %v743_v13 }
 0x286 PF: > { %s15_s20 = sadd.s32 1, %s976_s20   ;;  %s1142_s18 = smov %s972_s19 }
 0x287   : > { %p12_p5 = scmp.ge.s32.totalorder %s15_s20, 4   ;;  %s1143_s19 = smov %s1145_s21 }
 0x289   :  { %14 = sbr.rel (!%p12_p5) target bundleno = 2 (0x2), region = 70 }

</bundles_post_ra>
